<compile_context>
chip_gen: v7x
topology: tpu7x:2x2x1
jax: 0.10.0
libtpu: 0.0.40
codegen_flags: <defaults>
</compile_context>

<pallas_src>
from functools import partial

import jax
import jax.numpy as jnp
from jax.experimental import pallas as pl
from jax.experimental.pallas import tpu as pltpu  # noqa: F401  (not needed at this footprint)


def policy_net_kernel(x_ref, w1_ref, b1_ref, w2_ref, b2_ref, o_ref,
                      *, state_dim, action_dim, action_bound):
    # Layout: batch on sublanes, features on lanes.
    #   x: (B, S)   w1: (S, H)   b1: (1, H)   w2: (A, H)   b2: (1, A)   o: (B, A)
    x = x_ref[...]
    w1 = w1_ref[...]
    b1 = b1_ref[...]
    w2 = w2_ref[...]
    b2 = b2_ref[...]

    # fc1: h = relu(x @ W1^T + b1) as `state_dim` unrolled rank-1 MACs (VPU only).
    # x[:, k:k+1] is (B, 1), w1[k:k+1, :] is (1, H); their product broadcasts to (B, H).
    acc = b1                                            # (1, H) -> broadcasts to (B, H)
    for k in range(state_dim):
        acc = acc + x[:, k:k + 1] * w1[k:k + 1, :]      # (B, 1) * (1, H) -> (B, H)
    h = jnp.maximum(acc, 0.0)                           # ReLU

    # fc2: y = h @ W2^T via a cross-lane reduce (XLU); A is tiny (1 for Pendulum).
    cols = [jnp.sum(h * w2[a:a + 1, :], axis=1, keepdims=True)  # (B, 1)
            for a in range(action_dim)]
    y = cols[0] if action_dim == 1 else jnp.concatenate(cols, axis=1)  # (B, A)

    # tanh on the EUP; action_bound folded in as a compile-time constant.
    o_ref[...] = jnp.tanh(y + b2) * action_bound


def policy_net_forward(x, w1, b1, w2, b2, action_bound):
    """x: (B, state_dim) f32 -> (B, action_dim) f32.

    w1: (S, H) (= torch fc1.weight.T), b1: (H,),
    w2: (A, H) (= torch fc2.weight),   b2: (A,).
    """
    B, S = x.shape
    H = w1.shape[1]
    A = w2.shape[0]

    kernel = partial(policy_net_kernel,
                     state_dim=S, action_dim=A, action_bound=float(action_bound))

    # Everything fits comfortably in VMEM: single grid point, full-array blocks.
    full = lambda shape: pl.BlockSpec(shape, lambda: tuple(0 for _ in shape))
    out = pl.pallas_call(
        kernel,
        out_shape=jax.ShapeDtypeStruct((B, A), jnp.float32),
        grid=(),
        in_specs=[
            full((B, S)),
            full((S, H)),
            full((1, H)),
            full((A, H)),
            full((1, A)),
        ],
        out_specs=full((B, A)),
    )(x, w1, b1.reshape(1, H), w2, b2.reshape(1, A))
    return out                                          # (B, A)


def init_policy_net_params(key, state_dim, hidden_dim, action_dim):
    """torch.nn.Linear-style U(-1/sqrt(fan_in), +1/sqrt(fan_in)) init.

    Returns weights in the kernel's layout:
      w1: (state_dim, hidden_dim)   (== torch fc1.weight.T)
      w2: (action_dim, hidden_dim)  (== torch fc2.weight)
    """
    k1, k2, k3, k4 = jax.random.split(key, 4)
    lim1 = 1.0 / jnp.sqrt(jnp.float32(state_dim))
    lim2 = 1.0 / jnp.sqrt(jnp.float32(hidden_dim))
    w1 = jax.random.uniform(k1, (state_dim, hidden_dim), jnp.float32, -lim1, lim1)
    b1 = jax.random.uniform(k2, (hidden_dim,), jnp.float32, -lim1, lim1)
    w2 = jax.random.uniform(k3, (action_dim, hidden_dim), jnp.float32, -lim2, lim2)
    b2 = jax.random.uniform(k4, (action_dim,), jnp.float32, -lim2, lim2)
    return w1, b1, w2, b2


if __name__ == "__main__":
    # Pendulum-v1: state_dim=3, action_dim=1, action_bound=2.0; hidden_dim=64.
    state_dim, hidden_dim, action_dim = 3, 64, 1
    action_bound = 2.0
    batch = 8

    key = jax.random.PRNGKey(0)
    kx, kp = jax.random.split(key)
    x = jax.random.normal(kx, (batch, state_dim), dtype=jnp.float32)
    w1, b1, w2, b2 = init_policy_net_params(kp, state_dim, hidden_dim, action_dim)

    out = policy_net_forward(x, w1, b1, w2, b2, action_bound)
    out = jax.block_until_ready(out)

    # Pure-JAX reference (same math as the PyTorch forward; kernel weight layout).
    ref = jnp.tanh(jnp.maximum(x @ w1 + b1, 0.0) @ w2.T + b2) * action_bound
    assert out.shape == (batch, action_dim)
    assert jnp.allclose(out, ref, atol=1e-5, rtol=1e-5), "mismatch vs reference"

    print("KERNEL_OK")
</pallas_src>

<mosaic_0001>
module attributes {stable_mosaic.version = 11 : i64} {
  func.func @policy_net_kernel(%arg0: memref<8x3xf32, #tpu.memory_space<vmem>>, %arg1: memref<3x64xf32, #tpu.memory_space<vmem>>, %arg2: memref<1x64xf32, #tpu.memory_space<vmem>>, %arg3: memref<1x64xf32, #tpu.memory_space<vmem>>, %arg4: memref<1x1xf32, #tpu.memory_space<vmem>>, %arg5: memref<8x1xf32, #tpu.memory_space<vmem>>) attributes {dimension_semantics = [], scalar_prefetch = 0 : i64, scratch_operands = 0 : i64, tpu.core_type = #tpu.core_type<tc>} {
    %c0 = arith.constant 0 : index
    %c0_0 = arith.constant 0 : index
    %0 = vector.load %arg0[%c0, %c0_0] : memref<8x3xf32, #tpu.memory_space<vmem>>, vector<8x3xf32>
    %c0_1 = arith.constant 0 : index
    %c0_2 = arith.constant 0 : index
    %1 = vector.load %arg1[%c0_1, %c0_2] : memref<3x64xf32, #tpu.memory_space<vmem>>, vector<3x64xf32>
    %c0_3 = arith.constant 0 : index
    %c0_4 = arith.constant 0 : index
    %2 = vector.load %arg2[%c0_3, %c0_4] : memref<1x64xf32, #tpu.memory_space<vmem>>, vector<1x64xf32>
    %c0_5 = arith.constant 0 : index
    %c0_6 = arith.constant 0 : index
    %3 = vector.load %arg3[%c0_5, %c0_6] : memref<1x64xf32, #tpu.memory_space<vmem>>, vector<1x64xf32>
    %c0_7 = arith.constant 0 : index
    %c0_8 = arith.constant 0 : index
    %4 = vector.load %arg4[%c0_7, %c0_8] : memref<1x1xf32, #tpu.memory_space<vmem>>, vector<1x1xf32>
    %5 = vector.extract_strided_slice %0 {offsets = [0, 0], sizes = [8, 1], strides = [1, 1]} : vector<8x3xf32> to vector<8x1xf32>
    %6 = vector.extract_strided_slice %1 {offsets = [0, 0], sizes = [1, 64], strides = [1, 1]} : vector<3x64xf32> to vector<1x64xf32>
    %7 = vector.broadcast %5 : vector<8x1xf32> to vector<8x64xf32>
    %8 = vector.broadcast %6 : vector<1x64xf32> to vector<8x64xf32>
    %9 = arith.mulf %7, %8 : vector<8x64xf32>
    %10 = vector.broadcast %2 : vector<1x64xf32> to vector<8x64xf32>
    %11 = arith.addf %10, %9 : vector<8x64xf32>
    %12 = vector.extract_strided_slice %0 {offsets = [0, 1], sizes = [8, 1], strides = [1, 1]} : vector<8x3xf32> to vector<8x1xf32>
    %13 = vector.extract_strided_slice %1 {offsets = [1, 0], sizes = [1, 64], strides = [1, 1]} : vector<3x64xf32> to vector<1x64xf32>
    %14 = vector.broadcast %12 : vector<8x1xf32> to vector<8x64xf32>
    %15 = vector.broadcast %13 : vector<1x64xf32> to vector<8x64xf32>
    %16 = arith.mulf %14, %15 : vector<8x64xf32>
    %17 = arith.addf %11, %16 : vector<8x64xf32>
    %18 = vector.extract_strided_slice %0 {offsets = [0, 2], sizes = [8, 1], strides = [1, 1]} : vector<8x3xf32> to vector<8x1xf32>
    %19 = vector.extract_strided_slice %1 {offsets = [2, 0], sizes = [1, 64], strides = [1, 1]} : vector<3x64xf32> to vector<1x64xf32>
    %20 = vector.broadcast %18 : vector<8x1xf32> to vector<8x64xf32>
    %21 = vector.broadcast %19 : vector<1x64xf32> to vector<8x64xf32>
    %22 = arith.mulf %20, %21 : vector<8x64xf32>
    %23 = arith.addf %17, %22 : vector<8x64xf32>
    %cst = arith.constant 0.000000e+00 : f32
    %24 = vector.broadcast %cst : f32 to vector<8x64xf32>
    %25 = arith.maximumf %23, %24 : vector<8x64xf32>
    %26 = vector.broadcast %3 : vector<1x64xf32> to vector<8x64xf32>
    %27 = arith.mulf %25, %26 : vector<8x64xf32>
    %cst_9 = arith.constant dense<0.000000e+00> : vector<8xf32>
    %28 = vector.multi_reduction <add>, %27, %cst_9 [1] : vector<8x64xf32> to vector<8xf32>
    %29 = vector.shape_cast %28 : vector<8xf32> to vector<8x1xf32>
    %30 = vector.broadcast %4 : vector<1x1xf32> to vector<8x1xf32>
    %31 = arith.addf %29, %30 : vector<8x1xf32>
    %32 = math.tanh %31 : vector<8x1xf32>
    %cst_10 = arith.constant 2.000000e+00 : f32
    %33 = vector.broadcast %cst_10 : f32 to vector<8x1xf32>
    %34 = arith.mulf %32, %33 : vector<8x1xf32>
    %c0_11 = arith.constant 0 : index
    %c0_12 = arith.constant 0 : index
    %35 = vector.load %arg5[%c0_11, %c0_12] : memref<8x1xf32, #tpu.memory_space<vmem>>, vector<8x1xf32>
    tpu.vector_store %arg5[%c0_11, %c0_12], %34 {strides = array<i32>} : memref<8x1xf32, #tpu.memory_space<vmem>>, vector<8x1xf32>,
    return
  }
}

</mosaic_0001>

<bundles_post_ra>
// kernel: tpu_custom_call.1
= control target key start
LH: loop header
LB: loop body
LE: loop exit
PB: predicated region body
PF: predicated region fallthrough
CT: control target
= control target key end

     0   :  { %v103_v0 = vmov 0   ;;  %v104_v2 = vmov 2   ;;  %v105_v3 = vmov 1   ;;  %v32_v5 = vlaneseq  ;;  %s154_s0 = inlined_call_operand.vmem [shape: f32[8,3], index: 0, kind: input, shape index: {}]   ;;  %s155_s4 = inlined_call_operand.<no memory space> [shape: f32[1,1], index: 4, kind: input, shape index: {}]   ;;  %s156_s1 = inlined_call_operand.vmem [shape: f32[3,64], index: 1, kind: input, shape index: {}]   ;;  %s157_s2 = inlined_call_operand.vmem [shape: f32[1,64], index: 2, kind: input, shape index: {}]   ;;  %s158_s3 = inlined_call_operand.vmem [shape: f32[1,64], index: 3, kind: input, shape index: {}]   ;;  %s159_s5 = inlined_call_operand.vmem [shape: f32[8,1], index: 5, kind: output, shape index: {}]  }
   0x1   :  { %97 = vset.pattern.permute.xlu0 %v103_v0  ;;  %v22_v1 = vld [vmem:[%s154_s0] sm:$0xff]  ;;  %99 = vset.pattern.permute.xlu1 %v104_v2  ;;  %v10_v4 = vstv %s155_s4  ;;  %vm72_vm0 = vcmask 523264   ;;  %vm85_vm1 = vcmask 7168  }
   0x2   :  { %29 = vperm.xlu0 %97, %v22_v1   ;;  %55 = vperm.xlu1 %99, %v22_v1   ;;  %11 = vst [vmem:[#allocation2] sm:$0x1] %v10_v4  ;;  %v33_v6 = vshrl.u32 %v32_v5, 7  ;;  %v23_v8 = vld [vmem:[%s156_s1] sm:$0x7] }
   0x3   :  { %v91_v16 = vld [vmem:[%s157_s2] ss:$0 sm:$0xff] }
   0x4   :  { %v34_v7 = vsub.s32 0, %v33_v6  ;;  %v50_v10 = vsub.s32 1, %v33_v6  ;;  %v60_v11 = vsub.s32 2, %v33_v6  ;;  %v92_v24 = vld [vmem:[%s158_s3] ss:$0 sm:$0xff] }
   0x6   :  { %98 = vset.pattern.permute.xlu0 %v105_v3  ;;  %v35_v9 = vrot.slane %v23_v8, %v34_v7  ;;  %v51_v14 = vrot.slane %v23_v8, %v50_v10  ;;  %v61_v15 = vrot.slane %v23_v8, %v60_v11 }
   0x7   :  { %45 = vperm.xlu0 %98, %v22_v1  }
   0x9   :  { %v93_v28 = vld [vmem:[#allocation2] ss:$0 sm:$0xff] }
   0xb   :  { %100 = vset.pattern.permute.xlu0 %v104_v2 }
  0x81   :  { %v30_v12 = vpop.permute.xlu0 %29  ;;  %v56_v17 = vpop.permute.xlu1 %55 }
  0x82   :  { %v36_v13 = vmul.f32 %v35_v9, %v30_v12  ;;  %v62_v21 = vmul.f32 %v61_v15, %v56_v17 }
  0x84   :  { %v43_v19 = vadd.f32 %v91_v16, %v36_v13 }
  0x86   :  { %v46_v18 = vpop.permute.xlu0 %45 }
  0x87   :  { %v52_v20 = vmul.f32 %v51_v14, %v46_v18 }
  0x89   :  { %v53_v22 = vadd.f32 %v52_v20, %v43_v19 }
  0x8b   :  { %v63_v23 = vadd.f32 %v62_v21, %v53_v22 }
  0x8d   :  { %v64_v25 = vmax.f32 %v63_v23, 0.0 }
  0x8f   :  { %v71_v26 = vmul.f32 %v92_v24, %v64_v25 }
  0x91   :  { %v73_v27 = vsel %vm72_vm0, %v71_v26, 0.0 }
  0x92   :  { %74 = vadd.xlane.f32.xlu1 %v73_v27 }
 0x11f   :  { %v75_v29 = vpop.xlane.xlu1 %74 }
 0x120   :  { %v82_v30 = vadd.f32 %v93_v28, %v75_v29 }
 0x122   :  { %101 = vtanh.f32 %v82_v30 }
 0x12c   :  { %v102_v31 = vpop.eup %101 }
 0x12d   :  { %v84_v32 = vmul.f32 2.0, %v102_v31 }
 0x12f   :  { %86 = vst.msk [vmem:[%s159_s5] sm:$0xff] %vm85_vm1, %v84_v32 }

</bundles_post_ra>
